<compile_context>
chip_gen: v7x
topology: tpu7x:2x2x1
jax: 0.10.0
libtpu: 0.0.40
codegen_flags: <defaults>
</compile_context>

<pallas_src>
import math

import numpy as np
import jax
import jax.numpy as jnp
from jax.experimental import pallas as pl
from jax.experimental.pallas import tpu as pltpu

# ----------------------------------------------------------------------------- config
N = 128         # nodes (demo size; 8 grid steps)
C = 32          # channels (multiplicity of each irrep)
E = 8           # num_elements (one-hot node_attrs)
K = 4           # (lmax+1)^2 with lmax = 1
BN = 16         # nodes per grid step (raise to 128/256-multiples for production N)
DOUT = 4 * C    # target irreps dim: C x 0e + C x 1o  (= 128 lanes, one full vreg width)
NCOEF = 5       # fused closed-form coefficient tables (A, B, C, D, E below)


# --------------------------------------------------------------- coupling (U) tensors
# Used only by the float64 reference; the kernel evaluates the same (sparse) contraction
# in closed form with the path-normalisation constants folded into its weight tables.
def _normalize_paths(u):
    flat = u.reshape(-1, u.shape[-1]).astype(np.float64)
    flat = flat / np.linalg.norm(flat, axis=0, keepdims=True)
    return flat.reshape(u.shape).astype(np.float32)


def build_u_tensors():
    u1_0 = np.zeros((1, K, 1));            u1_0[0, 0, 0] = 1.0
    u1_1 = np.zeros((3, K, 1))
    for m in range(3):
        u1_1[m, 1 + m, 0] = 1.0

    u2_0 = np.zeros((1, K, K, 2));         u2_0[0, 0, 0, 0] = 1.0
    for a in range(3):
        u2_0[0, 1 + a, 1 + a, 1] = 1.0
    u2_1 = np.zeros((3, K, K, 1))
    for m in range(3):
        u2_1[m, 0, 1 + m, 0] = 1.0
        u2_1[m, 1 + m, 0, 0] = 1.0

    u3_0 = np.zeros((1, K, K, K, 2));      u3_0[0, 0, 0, 0, 0] = 1.0
    for a in range(3):
        u3_0[0, 0, 1 + a, 1 + a, 1] += 1.0
        u3_0[0, 1 + a, 0, 1 + a, 1] += 1.0
        u3_0[0, 1 + a, 1 + a, 0, 1] += 1.0
    u3_1 = np.zeros((3, K, K, K, 2))
    for m in range(3):
        u3_1[m, 0, 0, 1 + m, 0] += 1.0
        u3_1[m, 0, 1 + m, 0, 0] += 1.0
        u3_1[m, 1 + m, 0, 0, 0] += 1.0
        for a in range(3):
            for b in range(3):
                for c in range(3):
                    val = float((a == b) * (c == m) + (a == c) * (b == m) + (b == c) * (a == m))
                    u3_1[m, 1 + a, 1 + b, 1 + c, 1] += val

    us = {"u1_0": u1_0, "u2_0": u2_0, "u3_0": u3_0,
          "u1_1": u1_1, "u2_1": u2_1, "u3_1": u3_1}
    return {k: _normalize_paths(v) for k, v in us.items()}


# ---------------------------------------------------------------------------- params
def init_params(key):
    p_counts = {"w3_0": 2, "w2_0": 2, "w1_0": 1, "w3_1": 2, "w2_1": 1, "w1_1": 1}
    keys = jax.random.split(key, len(p_counts) + 2)
    params = {}
    for kk, (name, p) in zip(keys[: len(p_counts)], p_counts.items()):
        # element-dependent contraction weights, stored [num_paths, num_elements, channels]
        params[name] = jax.random.normal(kk, (p, E, C), dtype=jnp.float32) / float(p)
    # o3.Linear internal weights: one [C, C] mixing matrix per output irrep type
    params["a0"] = jax.random.normal(keys[-2], (C, C), dtype=jnp.float32)
    params["a1"] = jax.random.normal(keys[-1], (C, C), dtype=jnp.float32)
    return params


def build_fused_weights(params):
    """Trace-time weight fusion.

    Closed-form correlation-3 contraction for lmax=1 (all path norms folded in):
        0e slab :  s        = (A*x0^2 + B*x0 + C + D*r2) * x0 + E*r2
        1o slab :  v_out[m] = (A*x0^2 + B*x0 + C + D*r2) * v[m]          (E column = 0)
    Each of the five coefficient tables is laid out [E, 4C] with the 0e / 1o slab
    structure already baked in, so the in-kernel one-hot mix produces vreg-aligned
    [BN, 4C] coefficient blocks with zero lane shuffles.

    Returns:
      w_all  [E, 5*4C] f32 : the five fused coefficient tables, concatenated lane-wise.
      b_lin  [4C, 4C] bf16 : the o3.Linear as one block-permuted matrix (a0 for the 0e
                             block, a1 scattered so the matmul lands directly in the final
                             e3nn layout), with the 1/sqrt(C) path norm folded in.
    """
    s3, s5, s6 = math.sqrt(3.0), math.sqrt(5.0), math.sqrt(6.0)

    def slab(c_scalar, c_vector):
        cs = np.asarray(c_scalar, np.float64)
        cv = np.asarray(c_vector, np.float64)
        return np.concatenate([cs, cv, cv, cv], axis=-1)            # [E, 4C]

    zero = np.zeros((E, C), np.float64)
    wA = slab(params["w3_0"][0],                    params["w3_1"][0])              # * x0^2
    wB = slab(params["w2_0"][0],                    np.asarray(params["w2_1"][0]) * (2.0 / s6))  # * x0
    wC = slab(params["w1_0"][0],                    np.asarray(params["w1_1"][0]) / s3)          # const
    wD = slab(params["w3_0"][1],                    np.asarray(params["w3_1"][1]) / s5)          # * r2
    wE = slab(np.asarray(params["w2_0"][1]) / s3,   zero)                                        # + r2
    w_all = np.concatenate([wA, wB, wC, wD, wE], axis=-1)            # [E, 5*4C]

    inv = 1.0 / math.sqrt(C)
    a0 = np.asarray(params["a0"], np.float64) * inv
    a1 = np.asarray(params["a1"], np.float64) * inv
    b = np.zeros((DOUT, DOUT), np.float64)
    b[0:C, 0:C] = a0                                   # scalar block
    rows = np.arange(C)
    for m in range(3):
        # z[:, C + m*C + c_in] (component m, channel c_in) -> out[:, C + 3*c_out + m]
        b[np.ix_(C + m * C + rows, C + 3 * rows + m)] = a1
    return jnp.asarray(w_all, jnp.float32), jnp.asarray(b, jnp.bfloat16)


# ---------------------------------------------------------------------------- kernel
def _block_kernel(x_ref, y_ref, sc_ref, w_ref, b_lin_ref, out_ref):
    X = x_ref[...]          # [BN, 4C] f32, slabs [x0 | v1 | v2 | v3], channel-minor
    y = y_ref[...]          # [BN, E]  one-hot element embedding
    w = w_ref[...]          # [E, 5*4C] fused coefficient tables

    # Element-dependent path weights: one-hot select as VPU broadcast-FMAs (exact f32,
    # no degenerate K=8 MXU matmul, no multi-pass precision needed).
    wp = y[:, 0:1] * w[0:1, :]
    for e in range(1, E):
        wp = wp + y[:, e:e + 1] * w[e:e + 1, :]
    # Five vreg-aligned [BN, 4C] coefficient blocks (128-lane boundaries -> free slices).
    cA = wp[:, 0 * DOUT:1 * DOUT]
    cB = wp[:, 1 * DOUT:2 * DOUT]
    cC = wp[:, 2 * DOUT:3 * DOUT]
    cD = wp[:, 3 * DOUT:4 * DOUT]
    cE = wp[:, 4 * DOUT:5 * DOUT]

    # Rotation invariants broadcast across the four K-slabs (the only sub-vreg lane work
    # left at C=32; these become whole-vreg slices for production C >= 128).
    Xsq = X * X
    x0 = X[:, 0:C]
    r2 = Xsq[:, C:2 * C] + Xsq[:, 2 * C:3 * C] + Xsq[:, 3 * C:4 * C]
    x0_b = jnp.concatenate([x0, x0, x0, x0], axis=-1)                # [BN, 4C]
    r2_b = jnp.concatenate([r2, r2, r2, r2], axis=-1)                # [BN, 4C]

    # Closed-form MACE correlation-3 symmetric contraction, full 128-lane width,
    # written directly in z layout (no concatenate):
    mult = (cA * x0_b + cB) * x0_b + cC + cD * r2_b
    z = mult * X + cE * r2_b                                         # [BN, 4C]

    # Fused o3.Linear: single-pass bf16 MXU matmul with f32 accumulation, output lands
    # directly in the final e3nn layout; add the skip connection.
    lin = jnp.dot(z.astype(jnp.bfloat16), b_lin_ref[...],
                  preferred_element_type=jnp.float32)
    out_ref[...] = lin + sc_ref[...]


# --------------------------------------------------------------------------- wrapper
def equivariant_product_basis_block(node_feats_kc, sc, node_attrs, w_all, b_lin, *, bn=BN):
    n = node_feats_kc.shape[0]
    assert n % bn == 0, "node count must be a multiple of the node block size"
    x_flat = node_feats_kc.reshape(n, K * C)   # k-major / c-minor -> lane-dense [N, 128]

    return pl.pallas_call(
        _block_kernel,
        out_shape=jax.ShapeDtypeStruct((n, DOUT), jnp.float32),
        grid=(n // bn,),
        in_specs=[
            pl.BlockSpec((bn, K * C), lambda i: (i, 0)),        # node_feats (flat, lane-dense)
            pl.BlockSpec((bn, E), lambda i: (i, 0)),            # node_attrs (one-hot)
            pl.BlockSpec((bn, DOUT), lambda i: (i, 0)),         # sc, whole 4C block
            pl.BlockSpec((E, NCOEF * DOUT), lambda i: (0, 0)),  # fused coefficient tables
            pl.BlockSpec((DOUT, DOUT), lambda i: (0, 0)),       # fused o3.Linear matrix (bf16)
        ],
        out_specs=pl.BlockSpec((bn, DOUT), lambda i: (i, 0)),   # final layout, lane-dense
        compiler_params=pltpu.CompilerParams(dimension_semantics=("parallel",)),
    )(x_flat, node_attrs, sc, w_all, b_lin)


# ------------------------------------------------------------------- float64 reference
def reference_forward(node_feats_kc, sc, node_attrs, params, u):
    """Dense-U float64 reference (full SymmetricContraction + o3.Linear + sc)."""
    x = np.transpose(np.asarray(node_feats_kc, np.float64), (0, 2, 1))   # [N, C, K]
    y = np.asarray(node_attrs, np.float64)

    def sym(u3, u2, u1, w3, w2, w1):
        u3, u2, u1 = (np.asarray(t, np.float64) for t in (u3, u2, u1))
        w3, w2, w1 = (np.asarray(t, np.float64) for t in (w3, w2, w1))
        w3m = np.einsum("be,pec->bpc", y, w3)
        w2m = np.einsum("be,pec->bpc", y, w2)
        w1m = np.einsum("be,pec->bpc", y, w1)
        out = np.einsum("mijkp,bpc,bck->bcmij", u3, w3m, x)
        out = out + np.einsum("mijp,bpc->bcmij", u2, w2m)
        out = np.einsum("bcmij,bcj->bcmi", out, x)
        out = out + np.einsum("mip,bpc->bcmi", u1, w1m)
        out = np.einsum("bcmi,bci->bcm", out, x)
        return out

    s = sym(u["u3_0"], u["u2_0"], u["u1_0"],
            params["w3_0"], params["w2_0"], params["w1_0"])[..., 0]
    v = sym(u["u3_1"], u["u2_1"], u["u1_1"],
            params["w3_1"], params["w2_1"], params["w1_1"])
    inv = 1.0 / math.sqrt(C)
    a0 = np.asarray(params["a0"], np.float64)
    a1 = np.asarray(params["a1"], np.float64)
    o_s = s @ a0 * inv
    o_v = np.einsum("bcm,cd->bdm", v, a1) * inv
    return (np.concatenate([o_s, o_v.reshape(x.shape[0], 3 * C)], axis=-1)
            + np.asarray(sc, np.float64))


# ------------------------------------------------------------------------------ main
if __name__ == "__main__":
    key = jax.random.PRNGKey(0)
    k_feat, k_attr, k_sc, k_param = jax.random.split(key, 4)

    node_feats = jax.random.normal(k_feat, (N, K, C), dtype=jnp.float32)   # k-major layout
    node_attrs = jax.nn.one_hot(jax.random.randint(k_attr, (N,), 0, E), E, dtype=jnp.float32)
    sc = jax.random.normal(k_sc, (N, DOUT), dtype=jnp.float32)

    params = init_params(k_param)
    w_all, b_lin = build_fused_weights(params)

    out = equivariant_product_basis_block(node_feats, sc, node_attrs, w_all, b_lin, bn=BN)
    out = jax.block_until_ready(out)

    ref = reference_forward(node_feats, sc, node_attrs, params, build_u_tensors())
    # Tolerance is set by the single-pass bf16 MXU o3.Linear (and bf16 b_lin storage);
    # everything upstream of that matmul (one-hot mix, closed-form contraction) is exact f32.
    np.testing.assert_allclose(np.asarray(out, np.float64), ref, rtol=2e-2, atol=2e-1)

    print("KERNEL_OK")
</pallas_src>

<mosaic_0001>
module attributes {stable_mosaic.version = 11 : i64} {
  func.func @_block_kernel(%arg0: i32, %arg1: memref<16x128xf32, #tpu.memory_space<vmem>>, %arg2: memref<16x8xf32, #tpu.memory_space<vmem>>, %arg3: memref<16x128xf32, #tpu.memory_space<vmem>>, %arg4: memref<8x640xf32, #tpu.memory_space<vmem>>, %arg5: memref<128x128xbf16, #tpu.memory_space<vmem>>, %arg6: memref<16x128xf32, #tpu.memory_space<vmem>>) attributes {dimension_semantics = [#tpu.dimension_semantics<parallel>], iteration_bounds = array<i64: 8>, scalar_prefetch = 0 : i64, scratch_operands = 0 : i64, tpu.core_type = #tpu.core_type<tc>, window_params = [{transform_indices = @transform_0, window_bounds = array<i64: 16, 128>}, {transform_indices = @transform_1, window_bounds = array<i64: 16, 8>}, {transform_indices = @transform_2, window_bounds = array<i64: 16, 128>}, {pipeline_mode = #tpu.pipeline_mode<synchronous>, transform_indices = @transform_3, window_bounds = array<i64: 8, 640>}, {pipeline_mode = #tpu.pipeline_mode<synchronous>, transform_indices = @transform_4, window_bounds = array<i64: 128, 128>}, {transform_indices = @transform_5, window_bounds = array<i64: 16, 128>}]} {
    %c0 = arith.constant 0 : index
    %c0_0 = arith.constant 0 : index
    %0 = vector.load %arg1[%c0, %c0_0] : memref<16x128xf32, #tpu.memory_space<vmem>>, vector<16x128xf32>
    %c0_1 = arith.constant 0 : index
    %c0_2 = arith.constant 0 : index
    %1 = vector.load %arg2[%c0_1, %c0_2] : memref<16x8xf32, #tpu.memory_space<vmem>>, vector<16x8xf32>
    %c0_3 = arith.constant 0 : index
    %c0_4 = arith.constant 0 : index
    %2 = vector.load %arg4[%c0_3, %c0_4] : memref<8x640xf32, #tpu.memory_space<vmem>>, vector<8x640xf32>
    %3 = vector.extract_strided_slice %1 {offsets = [0, 0], sizes = [16, 1], strides = [1, 1]} : vector<16x8xf32> to vector<16x1xf32>
    %4 = vector.extract_strided_slice %2 {offsets = [0, 0], sizes = [1, 640], strides = [1, 1]} : vector<8x640xf32> to vector<1x640xf32>
    %5 = vector.broadcast %3 : vector<16x1xf32> to vector<16x640xf32>
    %6 = vector.broadcast %4 : vector<1x640xf32> to vector<16x640xf32>
    %7 = arith.mulf %5, %6 : vector<16x640xf32>
    %8 = vector.extract_strided_slice %1 {offsets = [0, 1], sizes = [16, 1], strides = [1, 1]} : vector<16x8xf32> to vector<16x1xf32>
    %9 = vector.extract_strided_slice %2 {offsets = [1, 0], sizes = [1, 640], strides = [1, 1]} : vector<8x640xf32> to vector<1x640xf32>
    %10 = vector.broadcast %8 : vector<16x1xf32> to vector<16x640xf32>
    %11 = vector.broadcast %9 : vector<1x640xf32> to vector<16x640xf32>
    %12 = arith.mulf %10, %11 : vector<16x640xf32>
    %13 = arith.addf %7, %12 : vector<16x640xf32>
    %14 = vector.extract_strided_slice %1 {offsets = [0, 2], sizes = [16, 1], strides = [1, 1]} : vector<16x8xf32> to vector<16x1xf32>
    %15 = vector.extract_strided_slice %2 {offsets = [2, 0], sizes = [1, 640], strides = [1, 1]} : vector<8x640xf32> to vector<1x640xf32>
    %16 = vector.broadcast %14 : vector<16x1xf32> to vector<16x640xf32>
    %17 = vector.broadcast %15 : vector<1x640xf32> to vector<16x640xf32>
    %18 = arith.mulf %16, %17 : vector<16x640xf32>
    %19 = arith.addf %13, %18 : vector<16x640xf32>
    %20 = vector.extract_strided_slice %1 {offsets = [0, 3], sizes = [16, 1], strides = [1, 1]} : vector<16x8xf32> to vector<16x1xf32>
    %21 = vector.extract_strided_slice %2 {offsets = [3, 0], sizes = [1, 640], strides = [1, 1]} : vector<8x640xf32> to vector<1x640xf32>
    %22 = vector.broadcast %20 : vector<16x1xf32> to vector<16x640xf32>
    %23 = vector.broadcast %21 : vector<1x640xf32> to vector<16x640xf32>
    %24 = arith.mulf %22, %23 : vector<16x640xf32>
    %25 = arith.addf %19, %24 : vector<16x640xf32>
    %26 = vector.extract_strided_slice %1 {offsets = [0, 4], sizes = [16, 1], strides = [1, 1]} : vector<16x8xf32> to vector<16x1xf32>
    %27 = vector.extract_strided_slice %2 {offsets = [4, 0], sizes = [1, 640], strides = [1, 1]} : vector<8x640xf32> to vector<1x640xf32>
    %28 = vector.broadcast %26 : vector<16x1xf32> to vector<16x640xf32>
    %29 = vector.broadcast %27 : vector<1x640xf32> to vector<16x640xf32>
    %30 = arith.mulf %28, %29 : vector<16x640xf32>
    %31 = arith.addf %25, %30 : vector<16x640xf32>
    %32 = vector.extract_strided_slice %1 {offsets = [0, 5], sizes = [16, 1], strides = [1, 1]} : vector<16x8xf32> to vector<16x1xf32>
    %33 = vector.extract_strided_slice %2 {offsets = [5, 0], sizes = [1, 640], strides = [1, 1]} : vector<8x640xf32> to vector<1x640xf32>
    %34 = vector.broadcast %32 : vector<16x1xf32> to vector<16x640xf32>
    %35 = vector.broadcast %33 : vector<1x640xf32> to vector<16x640xf32>
    %36 = arith.mulf %34, %35 : vector<16x640xf32>
    %37 = arith.addf %31, %36 : vector<16x640xf32>
    %38 = vector.extract_strided_slice %1 {offsets = [0, 6], sizes = [16, 1], strides = [1, 1]} : vector<16x8xf32> to vector<16x1xf32>
    %39 = vector.extract_strided_slice %2 {offsets = [6, 0], sizes = [1, 640], strides = [1, 1]} : vector<8x640xf32> to vector<1x640xf32>
    %40 = vector.broadcast %38 : vector<16x1xf32> to vector<16x640xf32>
    %41 = vector.broadcast %39 : vector<1x640xf32> to vector<16x640xf32>
    %42 = arith.mulf %40, %41 : vector<16x640xf32>
    %43 = arith.addf %37, %42 : vector<16x640xf32>
    %44 = vector.extract_strided_slice %1 {offsets = [0, 7], sizes = [16, 1], strides = [1, 1]} : vector<16x8xf32> to vector<16x1xf32>
    %45 = vector.extract_strided_slice %2 {offsets = [7, 0], sizes = [1, 640], strides = [1, 1]} : vector<8x640xf32> to vector<1x640xf32>
    %46 = vector.broadcast %44 : vector<16x1xf32> to vector<16x640xf32>
    %47 = vector.broadcast %45 : vector<1x640xf32> to vector<16x640xf32>
    %48 = arith.mulf %46, %47 : vector<16x640xf32>
    %49 = arith.addf %43, %48 : vector<16x640xf32>
    %50 = vector.extract_strided_slice %49 {offsets = [0, 0], sizes = [16, 128], strides = [1, 1]} : vector<16x640xf32> to vector<16x128xf32>
    %51 = vector.extract_strided_slice %49 {offsets = [0, 128], sizes = [16, 128], strides = [1, 1]} : vector<16x640xf32> to vector<16x128xf32>
    %52 = vector.extract_strided_slice %49 {offsets = [0, 256], sizes = [16, 128], strides = [1, 1]} : vector<16x640xf32> to vector<16x128xf32>
    %53 = vector.extract_strided_slice %49 {offsets = [0, 384], sizes = [16, 128], strides = [1, 1]} : vector<16x640xf32> to vector<16x128xf32>
    %54 = vector.extract_strided_slice %49 {offsets = [0, 512], sizes = [16, 128], strides = [1, 1]} : vector<16x640xf32> to vector<16x128xf32>
    %55 = arith.mulf %0, %0 : vector<16x128xf32>
    %56 = vector.extract_strided_slice %0 {offsets = [0, 0], sizes = [16, 32], strides = [1, 1]} : vector<16x128xf32> to vector<16x32xf32>
    %57 = vector.extract_strided_slice %55 {offsets = [0, 32], sizes = [16, 32], strides = [1, 1]} : vector<16x128xf32> to vector<16x32xf32>
    %58 = vector.extract_strided_slice %55 {offsets = [0, 64], sizes = [16, 32], strides = [1, 1]} : vector<16x128xf32> to vector<16x32xf32>
    %59 = arith.addf %57, %58 : vector<16x32xf32>
    %60 = vector.extract_strided_slice %55 {offsets = [0, 96], sizes = [16, 32], strides = [1, 1]} : vector<16x128xf32> to vector<16x32xf32>
    %61 = arith.addf %59, %60 : vector<16x32xf32>
    %62 = tpu.concatenate %56, %56, %56, %56 in 1 : vector<16x32xf32>, vector<16x32xf32>, vector<16x32xf32>, vector<16x32xf32> -> vector<16x128xf32>
    %63 = tpu.concatenate %61, %61, %61, %61 in 1 : vector<16x32xf32>, vector<16x32xf32>, vector<16x32xf32>, vector<16x32xf32> -> vector<16x128xf32>
    %64 = arith.mulf %50, %62 : vector<16x128xf32>
    %65 = arith.addf %64, %51 : vector<16x128xf32>
    %66 = arith.mulf %65, %62 : vector<16x128xf32>
    %67 = arith.addf %66, %52 : vector<16x128xf32>
    %68 = arith.mulf %53, %63 : vector<16x128xf32>
    %69 = arith.addf %67, %68 : vector<16x128xf32>
    %70 = arith.mulf %69, %0 : vector<16x128xf32>
    %71 = arith.mulf %54, %63 : vector<16x128xf32>
    %72 = arith.addf %70, %71 : vector<16x128xf32>
    %73 = arith.truncf %72 : vector<16x128xf32> to vector<16x128xbf16>
    %c0_5 = arith.constant 0 : index
    %c0_6 = arith.constant 0 : index
    %74 = vector.load %arg5[%c0_5, %c0_6] : memref<128x128xbf16, #tpu.memory_space<vmem>>, vector<128x128xbf16>
    %cst = arith.constant dense<0.000000e+00> : vector<16x128xf32>
    %75 = tpu.matmul %73, %74, %cst {dimension_numbers = #tpu.dot_dimension_numbers<[1], [0], [0], [1], [0, 0, 1, 1], [], []>} : vector<16x128xbf16>, vector<128x128xbf16>, vector<16x128xf32> -> vector<16x128xf32>
    %c0_7 = arith.constant 0 : index
    %c0_8 = arith.constant 0 : index
    %76 = vector.load %arg3[%c0_7, %c0_8] : memref<16x128xf32, #tpu.memory_space<vmem>>, vector<16x128xf32>
    %77 = arith.addf %75, %76 : vector<16x128xf32>
    %c0_9 = arith.constant 0 : index
    %c0_10 = arith.constant 0 : index
    %78 = vector.load %arg6[%c0_9, %c0_10] : memref<16x128xf32, #tpu.memory_space<vmem>>, vector<16x128xf32>
    tpu.vector_store %arg6[%c0_9, %c0_10], %77 {strides = array<i32>} : memref<16x128xf32, #tpu.memory_space<vmem>>, vector<16x128xf32>,
    return
  }
  func.func @transform_0(%arg0: i32) -> (i32, i32) {
    %c0_i32 = arith.constant 0 : i32
    %c0_i32_0 = arith.constant 0 : i32
    return %arg0, %c0_i32 : i32, i32
  }
  func.func @transform_1(%arg0: i32) -> (i32, i32) {
    %c0_i32 = arith.constant 0 : i32
    %c0_i32_0 = arith.constant 0 : i32
    return %arg0, %c0_i32 : i32, i32
  }
  func.func @transform_2(%arg0: i32) -> (i32, i32) {
    %c0_i32 = arith.constant 0 : i32
    %c0_i32_0 = arith.constant 0 : i32
    return %arg0, %c0_i32 : i32, i32
  }
  func.func @transform_3(%arg0: i32) -> (i32, i32) {
    %c0_i32 = arith.constant 0 : i32
    %c0_i32_0 = arith.constant 0 : i32
    %c0_i32_1 = arith.constant 0 : i32
    return %c0_i32, %c0_i32_0 : i32, i32
  }
  func.func @transform_4(%arg0: i32) -> (i32, i32) {
    %c0_i32 = arith.constant 0 : i32
    %c0_i32_0 = arith.constant 0 : i32
    %c0_i32_1 = arith.constant 0 : i32
    return %c0_i32, %c0_i32_0 : i32, i32
  }
  func.func @transform_5(%arg0: i32) -> (i32, i32) {
    %c0_i32 = arith.constant 0 : i32
    %c0_i32_0 = arith.constant 0 : i32
    return %arg0, %c0_i32 : i32, i32
  }
}

</mosaic_0001>

<bundles_post_ra>
// kernel: tpu_custom_call.1
= control target key start
LH: loop header
LB: loop body
LE: loop exit
PB: predicated region body
PF: predicated region fallthrough
CT: control target
= control target key end

     0   :  { %s1983_s0 = inlined_call_operand.vmem [shape: f32[128,128], index: 0, kind: input, shape index: {}]   ;;  %s1984_s1 = inlined_call_operand.vmem [shape: f32[128,8], index: 1, kind: input, shape index: {}]   ;;  %s1985_s2 = inlined_call_operand.hbm [shape: f32[128,128], index: 2, kind: input, shape index: {}]   ;;  %s1986_s3 = inlined_call_operand.hbm [shape: f32[8,640], index: 3, kind: input, shape index: {}]   ;;  %s1987_s4 = inlined_call_operand.hbm [shape: bf16[128,128], index: 4, kind: input, shape index: {}]   ;;  %s1988_s5 = inlined_call_operand.hbm [shape: f32[128,128], index: 5, kind: output, shape index: {}]  }
   0x1   :  { %2008 = sst [smem:[#allocation26_spill]] %s1986_s3 }
   0x2   :  { %10 = vsyncpa [#allocation3], 0 }
   0x3   :  { %12 = vsyncpa [#allocation3 + $0x1], 0 }
   0x4   :  { %13 = vsyncpa [#allocation6], 0 }
   0x5   :  { %14 = vsyncpa [#allocation4], 0 }
   0x6   :  { %16 = vsyncpa [#allocation4 + $0x1], 0  ;;  %s1415_s18 = smov 0   ;;  %s1417_s19 = smov 0  }
   0x7   :  { %s1419_s20 = smov 0   ;;  %s1421_s21 = smov 0  }
   0x8 LB: > { %s1436_s22 = sadd.s32 4294967295, %s1360_s21   ;;  %s1035_s23 = sadd.s32 4294967294, %s1360_s21   ;;  %s1360_s21 = sphi %s1421_s21, %s2055_s21   ;;  %s1356_s20 = sphi %s1419_s20, %s2054_s20   ;;  %s1352_s19 = sphi %s1417_s19, %s2053_s19   ;;  %s1348_s18 = sphi %s1415_s18, %s2052_s18  }
   0x9   : > { %s1440_s24 = sadd.s32 1, %s1360_s21   ;;  %s81_s25 = sadd.s32 1, %s1356_s20 }
   0xa   : > { %s78_s26 = ssub.s32 %s1360_s21, %s1440_s24  ;;  %p88_p0 = scmp.ne.s32.totalorder %s1356_s20, %s1352_s19 }
   0xb   : > { %p79_p1 = scmp.eq.s32.totalorder %s78_s26, 0  ;;  %p89_p2 = scmp.eq.s32.totalorder %s1360_s21, 0 }
   0xc   : > { %p94_p3 = scmp.ne.s32.totalorder %s1352_s19, %s1348_s18  ;;  %p1989_p4 = scmp.eq.s32.totalorder %s1436_s22, 0 }
   0xd   : > { %s1452_s27 = scalar_select %p79_p1, %s1356_s20, %s81_s25  }
   0xe   : > { %p1454_p5 = por %p89_p2, %p88_p0  ;;  %p1460_p6 = por %p1989_p4, %p94_p3 }
   0xf   : > { %2009 = sst [smem:[#allocation12_spill]] %s1452_s27  ;;  %p160_p7 = scmp.eq.s32.totalorder %s1436_s22, 7 }
  0x10   : > { %s2011_s29 = scalar_select %p1460_p6, 1, 0 }
  0x11   : > { %p166_p8 = scmp.eq.s32.totalorder %s1035_s23, 7  ;;  %p1036_p9 = scmp.ge.s32.totalorder %s1360_s21, 1 }
  0x12   : > { %p173_p10 = scmp.lt.s32.totalorder %s1360_s21, 9  ;;  %p1467_p11 = por %p160_p7, %p88_p0 }
  0x13   : > { %p1471_p12 = por %p166_p8, %p94_p3  ;;  %s1362_s8 = smov [#allocation5]  }
  0x14   : > { %s2012_s30 = scalar_select %p1467_p11, 1, 0 }
  0x15   : > { %s2013_s6 = scalar_select %p1471_p12, 1, 0 }
  0x16   : > { %p1475_p13 = pnand %p1036_p9, %p173_p10  ;;  %s186_s9 = sshll.u32 %s1362_s8, 4  ;;  %s187_s9 = int_to_ptr.vmem [resolvable:$true] %s186_s9 }
  0x17   : > { %p1125_p2 = scmp.lt.s32.totalorder %s1360_s21, 8  ;;  %s1363_s12 = smov [#allocation7]  }
  0x18   : > { %s2014_s7 = scalar_select %p1475_p13, 1, 0 }
  0x19   : > { %p1108_p1 = pneg %p1475_p13  ;;  %p1490_p3 = pnand %p1125_p2, %p1454_p5 }
  0x1a   : > { %s196_s13 = sshll.u32 %s1363_s12, 4  ;;  %s2017_s3 = sld [smem:[#allocation26_spill]]  ;;  %s1494_s13 = int_to_ptr.vmem [resolvable:$true] %s196_s13 }
  0x1b   : > { %p1484_p0 = pnand %p1108_p1, %p1989_p4 }
  0x1c   : > { %s2016_s11 = scalar_select %p1490_p3, 1, 0 }
  0x1d   : > { %p1206_p8 = pneg %p1484_p0 }
  0x20   : > { %s1204_s16 = scalar_lea.hbm %s2017_s3, 640 }
  0x21   : > { %p1205_p7 = scmp.ne.s32.totalorder %s2017_s3, %s1204_s16  ;;  %p1211_p10 = scmp.lt.u32.totalorder %s1204_s16, %s2017_s3 }
  0x23   : > { %p1207_p5 = pnand %p1206_p8, %p1205_p7 }
  0x25   : > { %p1208_p9 = pneg %p1207_p5 }
  0x27   : > { %p1213_p1 = pnand %p1211_p10, %p1208_p9 }
  0x29   : > { %1216 = shalt.err (!%p1213_p1)
}
  0x2a   : > { %s1217_s28 = scalar_lea.vmem %s187_s9, 640  ;;  %p1225_p11 = scmp.lt.s32.totalorder %s187_s9, %s187_s9 }
  0x2b   : > { %p1218_p2 = scmp.ne.s32.totalorder %s187_s9, %s1217_s28  ;;  %p1226_p6 = scmp.lt.s32.totalorder %s1217_s28, %s1217_s28 }
  0x2d   : > { %p1220_p4 = pnand %p1218_p2, %p1206_p8  ;;  %p1227_p13 = por %p1226_p6, %p1225_p11 }
  0x2f   : > { %p1221_p12 = pneg %p1220_p4 }
  0x31   : > { %p1228_p3 = pnand %p1227_p13, %p1221_p12 }
  0x33   : > { %1231 = shalt.err (!%p1228_p3)
}
  0x34   : > { %1111 = dma.hbm_to_vmem [thread:$0]  (!%p1484_p0), %s2017_s3, 640, %s187_s9, [#allocation6]  }
  0x35   : > { %s228_s14 = sand.u32 1, %s1356_s20   ;;  %s1232_s17 = scalar_lea.hbm %s1987_s4, 1024 }
  0x36   : > { %p1233_p4 = scmp.ne.s32.totalorder %s1987_s4, %s1232_s17  ;;  %p1239_p12 = scmp.lt.u32.totalorder %s1232_s17, %s1987_s4 }
  0x38   : > { %p1235_p6 = pnand %p1233_p4, %p1206_p8 }
  0x3a   : > { %p1236_p11 = pneg %p1235_p6 }
  0x3c   : > { %p1241_p13 = pnand %p1239_p12, %p1236_p11 }
  0x3e   : > { %1244 = shalt.err (!%p1241_p13)
}
  0x3f   : > { %s1245_s9 = scalar_lea.vmem %s1494_s13, 1024  ;;  %p1253_p9 = scmp.lt.s32.totalorder %s1494_s13, %s1494_s13 }
  0x40   : > { %p1246_p3 = scmp.ne.s32.totalorder %s1494_s13, %s1245_s9  ;;  %p1254_p10 = scmp.lt.s32.totalorder %s1245_s9, %s1245_s9 }
  0x42   : > { %p1248_p7 = pnand %p1246_p3, %p1206_p8  ;;  %p1255_p1 = por %p1254_p10, %p1253_p9 }
  0x44   : > { %p1249_p5 = pneg %p1248_p7 }
  0x46   : > { %p1256_p2 = pnand %p1255_p1, %p1249_p5 }
  0x48   : > { %1259 = shalt.err (!%p1256_p2)
}
  0x49   : > { %s1364_s8 = smov 64   ;;  %s1365_s12 = smov 4  }
  0x4a   : > { %1114 = dma.hbm_to_vmem [thread:$0]  (!%p1484_p0), %s1987_s4, 1024, %s1494_s13, [#allocation6], %s1364_s8, %s1364_s8, %s1365_s12  }
  0x4b   : > { %s1040_s17 = sshll.u32 %s228_s14, 4  ;;  %s1065_s23 = sshll.u32 %s1360_s21, 8 }
  0x4c   : > { %s1548_s28 = scalar_lea.hbm %s1985_s2, %s1065_s23  ;;  %s232_s9 = scalar_lea.vmem [#allocation2], %s1040_s17 }
  0x4d   : > { %s239_s3 = sshll.u32 %s232_s9, 4  ;;  %s1552_s10 = scalar_lea.sflag [#allocation3], %s228_s14  ;;  %s1550_s3 = int_to_ptr.vmem [resolvable:$true] %s239_s3 }
  0x4e   : > { %s1260_s27 = scalar_lea.hbm %s1548_s28, 256  ;;  %p2018_p0 = scmp.ne.s32.totalorder %s2016_s11, 0 }
  0x4f   : > { %p1261_p8 = scmp.ne.s32.totalorder %s1548_s28, %s1260_s27  ;;  %s1265_s12 = scalar_lea.hbm %s1985_s2, 2048 }
  0x50   : > { %p1262_p4 = pneg %p2018_p0  ;;  %p1266_p12 = scmp.lt.u32.totalorder %s1548_s28, %s1985_s2 }
  0x51   : > { %p1267_p13 = scmp.lt.u32.totalorder %s1265_s12, %s1260_s27  ;;  %p1269_p7 = scmp.lt.u32.totalorder %s1260_s27, %s1548_s28 }
  0x52   : > { %p1263_p6 = pnand %p1262_p4, %p1261_p8 }
  0x53   : > { %p1268_p3 = por %p1267_p13, %p1266_p12 }
  0x54   : > { %p1264_p11 = pneg %p1263_p6 }
  0x55   : > { %p1270_p5 = por %p1269_p7, %p1268_p3 }
  0x57   : > { %p1271_p9 = pnand %p1270_p5, %p1264_p11 }
  0x59   : > { %1274 = shalt.err (!%p1271_p9)
}
  0x5a   : > { %s1275_s14 = scalar_lea.vmem %s1550_s3, 256  ;;  %s1366_s17 = smov [#allocation2]  }
  0x5b   : > { %p1276_p10 = scmp.ne.s32.totalorder %s1550_s3, %s1275_s14  ;;  %s1280_s23 = sshll.u32 %s1366_s17, 4  ;;  %s1281_s23 = int_to_ptr.vmem [resolvable:$false] %s1280_s23 }
  0x5c   : > { %s1282_s25 = scalar_lea.vmem %s1281_s23, 512  ;;  %p1283_p8 = scmp.lt.s32.totalorder %s1550_s3, %s1281_s23 }
  0x5d   : > { %p1278_p1 = pnand %p1276_p10, %p1262_p4  ;;  %p1284_p6 = scmp.lt.s32.totalorder %s1282_s25, %s1275_s14 }
  0x5f   : > { %p1279_p2 = pneg %p1278_p1  ;;  %p1285_p12 = por %p1284_p6, %p1283_p8 }
  0x61   : > { %p1286_p13 = pnand %p1285_p12, %p1279_p2 }
  0x63   : > { %1289 = shalt.err (!%p1286_p13)
}
  0x64   : > { %s1367_s27 = smov 128   ;;  %s1368_s26 = smov 8  }
  0x65   : > { %1118 = dma.hbm_to_vmem [thread:$0]  (!%p2018_p0), %s1548_s28, 256, %s1550_s3, %s1552_s10, %s1367_s27, %s1367_s27, %s1368_s26  }
  0x66   : > { %p2019_p4 = scmp.ne.s32.totalorder %s2014_s7, 0 }
  0x68   : > { %251 = sbr.rel (%p2019_p4) target bundleno = 628 (0x274), region = 40 }
  0x6f   : > { %s1583_s9 = sand.u32 1, %s1352_s19   ;;  %p2020_p11 = scmp.ne.s32.totalorder %s2011_s29, 0 }
  0x70   : > { %s1044_s13 = sshll.u32 %s1583_s9, 4  ;;  %s254_s8 = scalar_lea.sflag [#allocation3], %s1583_s9 }
  0x71   : > { %s1589_s12 = scalar_lea.vmem [#allocation2], %s1044_s13 }
  0x72   : > { %1335 = dma.done.wait (%p2020_p11), %s254_s8, 256  }
  0x73   : > { %1337 = vsyncadd (%p2020_p11), %s254_s8, 4294967040  ;;  %p2021_p0 = scmp.eq.s32.totalorder %s1436_s22, 0 }
  0x75   : > { %1339 = dma.done.wait (%p2021_p0), [#allocation6], 1664   ;;  %p2022_p3 = pmov %p2021_p0 }
  0x76   : > { %s1048_s3 = sshll.u32 %s1436_s22, 1  ;;  %v1369_v0 = vmov 0   ;;  %s1370_s14 = smov 96   ;;  %v1372_v6 = vmov 1   ;;  %v1373_v8 = vmov 2   ;;  %v1374_v9 = vmov 3  }
  0x77   : > { %1341 = vsyncadd (%p2022_p3), [#allocation6], 4294965632  ;;  %1183 = vset.pattern.permute.xlu1 %v1369_v0  ;;  %p303_p7 = scmp.lt.s32.totalorder %s1048_s3, 15  ;;  %1182 = vset.pattern.permute.xlu0 %v1369_v0  ;;  %s1371_s17 = smov 64   ;;  %v1375_v10 = vmov 4   ;;  %v1376_v11 = vmov 6   ;;  %v336_v36 = vlaneseq }
  0x78   : > { %v1377_v12 = vmov 7   ;;  %v1378_v13 = vmov 5   ;;  %s1379_s23 = smov 32   ;;  %v1196_v14 = vld [vmem:[#allocation7] sm:$0xff]   ;;  %v1380_v15 = vmov 0.0   ;;  %v1197_v16 = vld [vmem:[#allocation7 + $0x8] sm:$0xff]  }
  0x79   : > { %s2057_s3 = smov (!%p303_p7, %s1048_s3), 15  ;;  %1076 = vmatprep.subr.bf16.mxu0 %v1380_v15  ;;  %v1198_v17 = vld [vmem:[#allocation7 + $0x10] sm:$0xff]   ;;  %v1199_v19 = vld [vmem:[#allocation7 + $0x18] sm:$0xff]   ;;  %v1200_v22 = vld [vmem:[#allocation7 + $0x20] sm:$0xff]   ;;  %vm1381_vm0 = vmmov 0   ;;  %v337_v38 = vshrl.u32 %v336_v36, 7 }
  0x7a   : > { %s1049_s7 = sshll.u32 %s2057_s3, 3  ;;  %1077 = vmatpush3.bf16.msra.mxu0 %v1196_v14  ;;  %v1201_v27 = vld [vmem:[#allocation7 + $0x28] sm:$0xff]   ;;  %v1202_v30 = vld [vmem:[#allocation7 + $0x30] sm:$0xff]   ;;  %v1203_v31 = vld [vmem:[#allocation7 + $0x38] sm:$0xff]   ;;  %1092 = vmatprep.mubr.msk.bf16.mxu0 %vm1381_vm0, %v1380_v15  ;;  %vm742_vm1 = vcmask 261120   ;;  %vm745_vm2 = vcmask 523264  }
  0x7b   : > { %s312_s10 = scalar_lea.vmem %s1984_s1, %s1049_s7  ;;  %s306_s16 = scalar_lea.vmem %s1983_s0, %s1049_s7  ;;  %1078 = vmatprep.subr.bf16.mxu0 %v1380_v15  ;;  %v338_v39 = vsub.s32 0, %v337_v38  ;;  %v321_v41 = vld [vmem:[#allocation5] sm:$0xff]  ;;  %v322_v42 = vld [vmem:[#allocation5 + $0x8] sm:$0xff]  ;;  %v323_v43 = vld [vmem:[#allocation5 + $0x10] sm:$0xff]  ;;  %v376_v46 = vsub.s32 1, %v337_v38  ;;  %v424_v48 = vsub.s32 2, %v337_v38 }
  0x7c   : > { %v320_v1 = vld [vmem:[%s312_s10 + $0x8] sm:$0xff]  ;;  %v1606_v2 = vld [vmem:[%s306_s16] sm:$0xff]  ;;  %v324_v44 = vld [vmem:[#allocation5 + $0x18] sm:$0xff]  ;;  %v472_v53 = vsub.s32 3, %v337_v38  ;;  %v520_v57 = vsub.s32 4, %v337_v38  ;;  %vm748_vm3 = vcmask 785408  }
  0x7d   : > { %v1608_v3 = vld [vmem:[%s306_s16 + $0x8] sm:$0xff]  ;;  %333 = vperm.xlu1 %1183, %v320_v1   ;;  %v1612_v4 = vmul.f32 %v1606_v2, %v1606_v2  ;;  %v319_v7 = vld [vmem:[%s312_s10] sm:$0xff]  ;;  %v339_v49 = vrot.slane %v321_v41, %v338_v39  ;;  %v343_v50 = vrot.slane %v322_v42, %v338_v39  ;;  %v347_v51 = vrot.slane %v323_v43, %v338_v39  ;;  %s301_s25 = scalar_lea.vmem [#allocation8], %s1044_s13  ;;  %s1066_s26 = sshll.u32 %s1436_s22, 8 }
  0x7e   : > { %2023 = vst [vmem:[#allocation13_spill] sm:$0xff] %v1608_v3  ;;  %v1618_v5 = vmul.f32 %v1608_v3, %v1608_v3  ;;  %1079 = vmatpush3.bf16.msra.mxu0 %v1197_v16  ;;  %v325_v47 = vld [vmem:[#allocation5 + $0x20] sm:$0xff]  ;;  %v1672_v52 = vrot.slane %v324_v44, %v338_v39  ;;  %v377_v55 = vrot.slane %v321_v41, %v376_v46  ;;  %s919_s27 = sshll.u32 %s301_s25, 4  ;;  %s1940_s7 = scalar_lea.hbm %s1988_s5, %s1066_s26  ;;  %s1935_s27 = int_to_ptr.vmem [resolvable:$true] %s919_s27 }
  0x7f   : > { %706 = vrot.lane.b32.xlu0 %v1612_v4, %s1370_s14  ;;  %1080 = vmatprep.subr.bf16.mxu0 %v1380_v15  ;;  %v1674_v54 = vrot.slane %v325_v47, %v338_v39  ;;  %v1676_v56 = vrot.slane %v322_v42, %v376_v46  ;;  %v1680_v59 = vrot.slane %v323_v43, %v376_v46  ;;  %s906_s22 = scalar_lea.sflag [#allocation4], %s1583_s9  ;;  %s1290_s13 = scalar_lea.vmem %s1935_s27, 256 }
  0x80   : > { %v1682_v60 = vrot.slane %v324_v44, %v376_v46  ;;  %v1684_v61 = vrot.slane %v325_v47, %v376_v46  ;;  %v1686_v62 = vrot.slane %v321_v41, %v424_v48  ;;  %v1690_v0 = vrot.slane %v322_v42, %v424_v48  ;;  %p1291_p5 = scmp.ne.s32.totalorder %s1935_s27, %s1290_s13  ;;  %p2049_p9 = scmp.ne.s32.totalorder %s2012_s30, 0 }
  0x81   : > { %714 = vrot.lane.b32.xlu1 %v1612_v4, %s1371_s17  ;;  %v1710_v14 = vrot.slane %v322_v42, %v520_v57  ;;  %v1714_v16 = vrot.slane %v324_v44, %v520_v57 }
  0x82   : > { %1184 = vset.pattern.permute.xlu1 %v1372_v6  ;;  %1081 = vmatpush3.bf16.msra.mxu0 %v1198_v17  ;;  %v664_v17 = vsub.s32 7, %v337_v38  ;;  %p1292_p10 = pnand %p1291_p5, %p2049_p9 }
  0x83   : > { %708 = vrot.lane.b32.xlu0 %v1618_v5, %s1370_s14  ;;  %1082 = vmatprep.subr.bf16.mxu0 %v1380_v15 }
  0x84   : > { %p1293_p1 = pneg %p1292_p10 }
  0x85   : > { %716 = vrot.lane.b32.xlu1 %v1618_v5, %s1371_s17 }
  0x86   : > { %1083 = vmatpush3.bf16.msra.mxu0 %v1199_v19 }
  0x87   : > { %328 = vperm.xlu0 %1182, %v319_v7   ;;  %1084 = vmatprep.subr.bf16.mxu0 %v1380_v15 }
  0x89   : > { %367 = vperm.xlu1 %1184, %v319_v7  }
  0x8a   : > { %1085 = vmatpush3.bf16.msra.mxu0 %v1200_v22  ;;  %v1720_v22 = vrot.slane %v325_v47, %v520_v57 }
  0x8b   : > { %1185 = vset.pattern.permute.xlu0 %v1372_v6  ;;  %1086 = vmatprep.subr.bf16.mxu0 %v1380_v15  ;;  %v1696_v6 = vrot.slane %v325_v47, %v424_v48 }
  0x8c   : > { %371 = vperm.xlu0 %1185, %v320_v1   ;;  %2026 = vst [vmem:[#allocation16_spill] sm:$0xff] %v1720_v22 }
  0x8d   : > { %1186 = vset.pattern.permute.xlu1 %v1373_v8  ;;  %v1700_v8 = vrot.slane %v322_v42, %v472_v53 }
  0x8e   : > { %415 = vperm.xlu1 %1186, %v319_v7   ;;  %1087 = vmatpush3.bf16.msra.mxu0 %v1201_v27 }
  0x8f   : > { %1088 = vmatprep.subr.bf16.mxu0 %v1380_v15 }
  0x90   : > { %1187 = vset.pattern.permute.xlu0 %v1374_v9 }
  0x91   : > { %463 = vperm.xlu0 %1187, %v319_v7  }
  0x92   : > { %419 = vperm.xlu1 %1186, %v320_v1   ;;  %1089 = vmatpush3.bf16.msra.mxu0 %v1202_v30 }
  0x93   : > { %1090 = vmatprep.subr.bf16.mxu0 %v1380_v15  ;;  %v1712_v15 = vrot.slane %v323_v43, %v520_v57 }
  0x95   : > { %1190 = vset.pattern.permute.xlu0 %v1375_v10 }
  0x96   : > { %1188 = vset.pattern.permute.xlu1 %v1374_v9  ;;  %515 = vperm.xlu0 %1190, %v320_v1   ;;  %v1702_v9 = vrot.slane %v323_v43, %v472_v53 }
  0x97   : > { %467 = vperm.xlu1 %1188, %v320_v1   ;;  %1091 = vmatpush3.bf16.msra.mxu0 %v1203_v31 }
  0x9a   : > { %1192 = vset.pattern.permute.xlu0 %v1376_v11 }
  0x9b   : > { %1189 = vset.pattern.permute.xlu1 %v1375_v10  ;;  %607 = vperm.xlu0 %1192, %v319_v7   ;;  %v1704_v10 = vrot.slane %v324_v44, %v472_v53 }
  0x9c   : > { %511 = vperm.xlu1 %1189, %v319_v7  }
  0x9f   : > { %1195 = vset.pattern.permute.xlu0 %v1377_v12 }
  0xa0   : > { %1191 = vset.pattern.permute.xlu1 %v1378_v13  ;;  %659 = vperm.xlu0 %1195, %v320_v1   ;;  %v616_v13 = vsub.s32 6, %v337_v38 }
  0xa1   : > { %559 = vperm.xlu1 %1191, %v319_v7  }
  0xa2   : > { %v1734_v31 = vrot.slane %v321_v41, %v616_v13  ;;  %v1736_v36 = vrot.slane %v322_v42, %v616_v13  ;;  %v1740_v39 = vrot.slane %v324_v44, %v616_v13  ;;  %v1742_v46 = vrot.slane %v325_v47, %v616_v13 }
  0xa4   : > { %730 = vrot.lane.b32.xlu0 %v1606_v2, %s1371_s17  ;;  %2030 = vst [vmem:[#allocation20_spill] sm:$0xff] %v1740_v39  ;;  %2031 = vst [vmem:[#allocation21_spill] sm:$0xff] %v1742_v46 }
  0xa5   : > { %563 = vperm.xlu1 %1191, %v320_v1  }
  0xa8   : > { %736 = vrot.lane.b32.xlu0 %v1606_v2, %s1370_s14 }
  0xa9   : > { %1193 = vset.pattern.permute.xlu1 %v1376_v11  ;;  %v1706_v11 = vrot.slane %v325_v47, %v472_v53 }
  0xaa   : > { %611 = vperm.xlu1 %1193, %v320_v1   ;;  %v1692_v1 = vrot.slane %v323_v43, %v424_v48 }
  0xae   : > { %1194 = vset.pattern.permute.xlu1 %v1377_v12  ;;  %v1708_v12 = vrot.slane %v321_v41, %v520_v57  ;;  %v1748_v57 = vrot.slane %v321_v41, %v664_v17 }
  0xaf   : > { %655 = vperm.xlu1 %1194, %v319_v7   ;;  %v1698_v7 = vrot.slane %v321_v41, %v472_v53  ;;  %v1746_v53 = vrot.slane %v323_v43, %v664_v17 }
  0xb1   : > { %2033 = vst [vmem:[#allocation23_spill] sm:$0xff] %v1746_v53 }
  0xb3   : > { %724 = vrot.lane.b32.xlu1 %v1606_v2, %s1379_s23 }
  0xb7   : > { %726 = vrot.lane.b32.xlu1 %v1608_v3, %s1379_s23 }
  0xbb   : > { %732 = vrot.lane.b32.xlu1 %v1608_v3, %s1371_s17 }
  0xbf   : > { %738 = vrot.lane.b32.xlu1 %v1608_v3, %s1370_s14 }
  0xf1   : > { %v707_v18 = vpop.permute.xlu0 %706 }
  0xf2   : > { %v712_v21 = vadd.f32 %v707_v18, %v1612_v4  ;;  %v1694_v4 = vrot.slane %v324_v44, %v424_v48  ;;  %v1744_v48 = vrot.slane %v322_v42, %v664_v17 }
  0xf4   : > { %2032 = vst [vmem:[#allocation22_spill] sm:$0xff] %v1744_v48 }
  0xf5   : > { %v709_v23 = vpop.permute.xlu0 %708 }
  0xf6   : > { %v713_v26 = vadd.f32 %v709_v23, %v1618_v5  ;;  %v568_v5 = vsub.s32 5, %v337_v38  ;;  %v1738_v38 = vrot.slane %v323_v43, %v616_v13 }
  0xf8   : > { %v1722_v23 = vrot.slane %v321_v41, %v568_v5  ;;  %v1728_v27 = vrot.slane %v323_v43, %v568_v5  ;;  %v1732_v30 = vrot.slane %v325_v47, %v568_v5  ;;  %2029 = vst [vmem:[#allocation19_spill] sm:$0xff] %v1738_v38  ;;  %v1760_v43 = vrot.slane %v325_v47, %v664_v17 }
  0xfa   : > { %2028 = vst [vmem:[#allocation18_spill] sm:$0xff] %v1732_v30  ;;  %2035 = vst [vmem:[#allocation25_spill] sm:$0xff] %v1760_v43 }
  0xfc   : > { %v1638_v20 = vpop.permute.xlu1 %333 }
  0xfd   : > { %v361_v41 = vmul.f32 %v339_v49, %v1638_v20  ;;  %v362_v46 = vmul.f32 %v343_v50, %v1638_v20  ;;  %v363_v22 = vmul.f32 %v347_v51, %v1638_v20 }
 0x100   : > { %v715_v24 = vpop.permute.xlu1 %714 }
 0x101   : > { %v1641_v25 = vadd.f32 %v715_v24, %v712_v21 }
 0x103   : > { %2024 = vst [vmem:[#allocation14_spill] sm:$0xff] %v1641_v25  ;;  %753 = vrot.lane.b32.xlu0 %v1641_v25, %s1370_s14 }
 0x104   : > { %v717_v28 = vpop.permute.xlu1 %716 }
 0x105   : > { %v1646_v29 = vadd.f32 %v717_v28, %v713_v26  ;;  %v1726_v26 = vrot.slane %v322_v42, %v568_v5  ;;  %v1730_v28 = vrot.slane %v324_v44, %v568_v5  ;;  %v1758_v42 = vrot.slane %v324_v44, %v664_v17 }
 0x106   : > { %v1670_v45 = vpop.permute.xlu0 %328 }
 0x107   : > { %2025 = vst [vmem:[#allocation15_spill] sm:$0xff] %v1646_v29  ;;  %759 = vrot.lane.b32.xlu0 %v1641_v25, %s1379_s23  ;;  %755 = vrot.lane.b32.xlu1 %v1646_v29, %s1370_s14  ;;  %v356_v18 = vmul.f32 %v339_v49, %v1670_v45  ;;  %2027 = vst [vmem:[#allocation17_spill] sm:$0xff] %v1730_v28  ;;  %v358_v38 = vmul.f32 %v347_v51, %v1670_v45 }
 0x108   : > { %v1658_v32 = vpop.permute.xlu1 %367  ;;  %2034 = vst [vmem:[#allocation24_spill] sm:$0xff] %v1758_v42  ;;  %v359_v53 = vmul.f32 %v1672_v52, %v1670_v45  ;;  %v360_v44 = vmul.f32 %v1674_v54, %v1670_v45 }
 0x109   : > { %v394_v19 = vmul.f32 %v377_v55, %v1658_v32  ;;  %v395_v5 = vmul.f32 %v1676_v56, %v1658_v32  ;;  %v396_v13 = vmul.f32 %v1680_v59, %v1658_v32  ;;  %v398_v47 = vmul.f32 %v1684_v61, %v1658_v32 }
 0x10b   : > { %765 = vrot.lane.b32.xlu0 %v1641_v25, %s1371_s17  ;;  %761 = vrot.lane.b32.xlu1 %v1646_v29, %s1379_s23  ;;  %v1688_v63 = vpop.permute.xlu0 %371  ;;  %v404_v25 = vadd.f32 %v394_v19, %v356_v18  ;;  %v397_v18 = vmul.f32 %v1682_v60, %v1658_v32  ;;  %v406_v28 = vadd.f32 %v396_v13, %v358_v38 }
 0x10c   : > { %v399_v49 = vmul.f32 %v377_v55, %v1688_v63  ;;  %v400_v51 = vmul.f32 %v1676_v56, %v1688_v63  ;;  %v365_v55 = vmul.f32 %v1674_v54, %v1638_v20  ;;  %v402_v56 = vmul.f32 %v1682_v60, %v1688_v63 }
 0x10d   : > { %v1660_v33 = vpop.permute.xlu1 %415 }
 0x10e   : > { %v442_v30 = vmul.f32 %v1686_v62, %v1660_v33  ;;  %v443_v17 = vmul.f32 %v1690_v0, %v1660_v33  ;;  %v444_v32 = vmul.f32 %v1692_v1, %v1660_v33  ;;  %v409_v13 = vadd.f32 %v399_v49, %v361_v41 }
 0x10f   : > { %767 = vrot.lane.b32.xlu1 %v1646_v29, %s1371_s17  ;;  %v357_v29 = vmul.f32 %v343_v50, %v1670_v45  ;;  %v401_v45 = vmul.f32 %v1680_v59, %v1688_v63  ;;  %v403_v59 = vmul.f32 %v1684_v61, %v1688_v63 }
 0x110   : > { %v1718_v21 = vpop.permute.xlu0 %463  ;;  %v452_v43 = vadd.f32 %v442_v30, %v404_v25  ;;  %v407_v25 = vadd.f32 %v397_v18, %v359_v53  ;;  %v445_v30 = vmul.f32 %v1694_v4, %v1660_v33  ;;  %v410_v53 = vadd.f32 %v400_v51, %v362_v46 }
 0x111   : > { %v1662_v34 = vpop.permute.xlu1 %419  ;;  %v405_v50 = vadd.f32 %v395_v5, %v357_v29  ;;  %v490_v42 = vmul.f32 %v1698_v7, %v1718_v21  ;;  %v364_v29 = vmul.f32 %v1672_v52, %v1638_v20  ;;  %v408_v5 = vadd.f32 %v398_v47, %v360_v44 }
 0x112   : > { %v491_v52 = vmul.f32 %v1700_v8, %v1718_v21  ;;  %v411_v18 = vadd.f32 %v401_v45, %v363_v22  ;;  %v446_v44 = vmul.f32 %v1696_v6, %v1660_v33  ;;  %v454_v47 = vadd.f32 %v444_v32, %v406_v28 }
 0x113   : > { %v453_v48 = vadd.f32 %v443_v17, %v405_v50  ;;  %v500_v3 = vadd.f32 %v490_v42, %v452_v43  ;;  %v455_v60 = vadd.f32 %v445_v30, %v407_v25  ;;  %v447_v61 = vmul.f32 %v1686_v62, %v1662_v34 }
 0x114   : > { %v448_v63 = vmul.f32 %v1690_v0, %v1662_v34  ;;  %v449_v42 = vmul.f32 %v1692_v1, %v1662_v34  ;;  %v450_v43 = vmul.f32 %v1694_v4, %v1662_v34  ;;  %v451_v22 = vmul.f32 %v1696_v6, %v1662_v34 }
 0x115   : > { %v1768_v19 = vpop.permute.xlu0 %515  ;;  %v492_v33 = vmul.f32 %v1702_v9, %v1718_v21  ;;  %v493_v28 = vmul.f32 %v1704_v10, %v1718_v21  ;;  %v501_v62 = vadd.f32 %v491_v52, %v453_v48  ;;  %v412_v4 = vadd.f32 %v402_v56, %v364_v29 }
 0x116   : > { %v1664_v35 = vpop.permute.xlu1 %467  ;;  %v413_v49 = vadd.f32 %v403_v59, %v365_v55  ;;  %v456_v50 = vadd.f32 %v446_v44, %v408_v5  ;;  %v494_v34 = vmul.f32 %v1706_v11, %v1718_v21  ;;  %v457_v6 = vadd.f32 %v447_v61, %v409_v13 }
 0x117   : > { %v458_v17 = vadd.f32 %v448_v63, %v410_v53  ;;  %v459_v51 = vadd.f32 %v449_v42, %v411_v18  ;;  %v495_v48 = vmul.f32 %v1698_v7, %v1664_v35  ;;  %v502_v25 = vadd.f32 %v492_v33, %v454_v47 }
 0x118   : > { %v461_v32 = vadd.f32 %v451_v22, %v413_v49  ;;  %v503_v30 = vadd.f32 %v493_v28, %v455_v60  ;;  %v504_v56 = vadd.f32 %v494_v34, %v456_v50  ;;  %v496_v59 = vmul.f32 %v1700_v8, %v1664_v35 }
 0x119   : > { %v497_v7 = vmul.f32 %v1702_v9, %v1664_v35  ;;  %v498_v13 = vmul.f32 %v1704_v10, %v1664_v35  ;;  %v505_v53 = vadd.f32 %v495_v48, %v457_v6  ;;  %v543_v18 = vmul.f32 %v1708_v12, %v1768_v19 }
 0x11a   : > { %v1794_v38 = vpop.permute.xlu0 %607  ;;  %v544_v44 = vmul.f32 %v1710_v14, %v1768_v19  ;;  %v545_v47 = vmul.f32 %v1712_v15, %v1768_v19  ;;  %v506_v61 = vadd.f32 %v496_v59, %v458_v17  ;;  %v2038_v17 = vld [vmem:[#allocation17_spill] sm:$0xff] }
 0x11b   : > { %v1666_v37 = vpop.permute.xlu1 %511  ;;  %v634_v55 = vmul.f32 %v1734_v31, %v1794_v38  ;;  %v635_v9 = vmul.f32 %v1736_v36, %v1794_v38  ;;  %v507_v63 = vadd.f32 %v497_v7, %v459_v51  ;;  %v553_v22 = vadd.f32 %v543_v18, %v505_v53 }
 0x11c   : > { %v538_v20 = vmul.f32 %v1708_v12, %v1666_v37  ;;  %v539_v0 = vmul.f32 %v1710_v14, %v1666_v37  ;;  %v540_v8 = vmul.f32 %v1712_v15, %v1666_v37  ;;  %v541_v15 = vmul.f32 %v1714_v16, %v1666_v37 }
 0x11d   : > { %v555_v18 = vadd.f32 %v545_v47, %v507_v63 }
 0x11e   : > { %v548_v46 = vadd.f32 %v538_v20, %v500_v3  ;;  %v460_v3 = vadd.f32 %v450_v43, %v412_v4  ;;  %v549_v52 = vadd.f32 %v539_v0, %v501_v62  ;;  %v499_v20 = vmul.f32 %v1706_v11, %v1664_v35  ;;  %v2037_v4 = vld [vmem:[#allocation22_spill] sm:$0xff] }
 0x11f   : > { %v1824_v41 = vpop.permute.xlu0 %659  ;;  %v546_v43 = vmul.f32 %v1714_v16, %v1768_v19  ;;  %v550_v28 = vadd.f32 %v540_v8, %v502_v25  ;;  %v551_v6 = vadd.f32 %v541_v15, %v503_v30 }
 0x120   : > { %v1668_v40 = vpop.permute.xlu1 %559  ;;  %v508_v42 = vadd.f32 %v498_v13, %v460_v3 }
 0x121   : > { %v586_v1 = vmul.f32 %v1722_v23, %v1668_v40  ;;  %v587_v29 = vmul.f32 %v1726_v26, %v1668_v40  ;;  %v588_v62 = vmul.f32 %v1728_v27, %v1668_v40  ;;  %v589_v51 = vmul.f32 %v2038_v17, %v1668_v40 }
 0x123   : > { %v731_v21 = vpop.permute.xlu0 %730  ;;  %v596_v5 = vadd.f32 %v586_v1, %v548_v46  ;;  %v597_v35 = vadd.f32 %v587_v29, %v549_v52  ;;  %v2036_v46 = vld [vmem:[#allocation13_spill] sm:$0xff]  ;;  %v687_v52 = vmul.f32 %v1748_v57, %v1824_v41  ;;  %v509_v29 = vadd.f32 %v499_v20, %v461_v32 }
 0x124   : > { %v1678_v58 = vpop.permute.xlu1 %563  ;;  %v598_v7 = vadd.f32 %v588_v62, %v550_v28  ;;  %v599_v20 = vadd.f32 %v589_v51, %v551_v6 }
 0x125   : > { %v591_v11 = vmul.f32 %v1722_v23, %v1678_v58  ;;  %v644_v60 = vadd.f32 %v634_v55, %v596_v5  ;;  %v592_v0 = vmul.f32 %v1726_v26, %v1678_v58  ;;  %v645_v50 = vadd.f32 %v635_v9, %v597_v35  ;;  %v2039_v55 = vld [vmem:[#allocation16_spill] sm:$0xff]  ;;  %v2040_v5 = vld [vmem:[#allocation19_spill] sm:$0xff] }
 0x126   : > { %v542_v30 = vmul.f32 %v2039_v55, %v1666_v37  ;;  %v636_v59 = vmul.f32 %v2040_v5, %v1794_v38  ;;  %v556_v9 = vadd.f32 %v546_v43, %v508_v42  ;;  %v593_v47 = vmul.f32 %v1728_v27, %v1678_v58  ;;  %v2045_v27 = vld [vmem:[#allocation21_spill] sm:$0xff] }
 0x127   : > { %v737_v33 = vpop.permute.xlu0 %736  ;;  %v601_v49 = vadd.f32 %v591_v11, %v553_v22  ;;  %v2042_v11 = vld [vmem:[#allocation18_spill] sm:$0xff]  ;;  %v638_v28 = vmul.f32 %v2045_v27, %v1794_v38 }
 0x128   : > { %v552_v35 = vadd.f32 %v542_v30, %v504_v56  ;;  %v646_v42 = vadd.f32 %v636_v59, %v598_v7  ;;  %v2047_v59 = vld [vmem:[#allocation25_spill] sm:$0xff] }
 0x129   : > { %v1724_v24 = vpop.permute.xlu1 %611  ;;  %v691_v7 = vmul.f32 %v2047_v59, %v1824_v41 }
 0x12a   : > { %v640_v3 = vmul.f32 %v1736_v36, %v1724_v24  ;;  %v641_v22 = vmul.f32 %v2040_v5, %v1724_v24 }
 0x12e   : > { %v1770_v39 = vpop.permute.xlu1 %655 }
 0x12f   : > { %v682_v14 = vmul.f32 %v1748_v57, %v1770_v39  ;;  %v683_v16 = vmul.f32 %v2037_v4, %v1770_v39 }
 0x131   : > { %v692_v34 = vadd.f32 %v682_v14, %v644_v60  ;;  %v693_v36 = vadd.f32 %v683_v16, %v645_v50  ;;  %v594_v60 = vmul.f32 %v2038_v17, %v1678_v58  ;;  %v2043_v14 = vld [vmem:[#allocation23_spill] sm:$0xff]  ;;  %v603_v16 = vadd.f32 %v593_v47, %v555_v18  ;;  %v2046_v17 = vld [vmem:[#allocation14_spill] sm:$0xff] }
 0x132   : > { %v725_v54 = vpop.permute.xlu1 %724 }
 0x133   : > { %v743_v10 = vsel %vm742_vm1, %v1606_v2, %v725_v54  ;;  %v639_v54 = vmul.f32 %v1734_v31, %v1724_v24  ;;  %v554_v31 = vadd.f32 %v544_v44, %v506_v61  ;;  %v2041_v44 = vld [vmem:[#allocation20_spill] sm:$0xff]  ;;  %v684_v61 = vmul.f32 %v2043_v14, %v1770_v39 }
 0x134   : > { %v746_v23 = vsel %vm745_vm2, %v743_v10, %v731_v21  ;;  %v547_v21 = vmul.f32 %v2039_v55, %v1768_v19  ;;  %v637_v8 = vmul.f32 %v2041_v44, %v1794_v38  ;;  %v688_v19 = vmul.f32 %v2037_v4, %v1824_v41 }
 0x135   : > { %v749_v48 = vsel %vm748_vm3, %v746_v23, %v737_v33  ;;  %v602_v13 = vadd.f32 %v592_v0, %v554_v31  ;;  %v642_v62 = vmul.f32 %v2041_v44, %v1724_v24  ;;  %v689_v0 = vmul.f32 %v2043_v14, %v1824_v41 }
 0x136   : > { %v727_v45 = vpop.permute.xlu1 %726  ;;  %v777_v53 = vmul.f32 %v749_v48, %v692_v34  ;;  %v557_v43 = vadd.f32 %v547_v21, %v509_v29  ;;  %v647_v23 = vadd.f32 %v637_v8, %v599_v20  ;;  %v595_v4 = vmul.f32 %v2042_v11, %v1678_v58 }
 0x137   : > { %v744_v1 = vsel %vm742_vm1, %v2036_v46, %v727_v45  ;;  %v649_v45 = vadd.f32 %v639_v54, %v601_v49  ;;  %v650_v37 = vadd.f32 %v640_v3, %v602_v13  ;;  %v604_v50 = vadd.f32 %v594_v60, %v556_v9  ;;  %v2048_v13 = vld [vmem:[#allocation15_spill] sm:$0xff] }
 0x138   : > { %v779_v15 = vadd.f32 %v777_v53, %v693_v36  ;;  %v694_v31 = vadd.f32 %v684_v61, %v646_v42  ;;  %v643_v38 = vmul.f32 %v2045_v27, %v1724_v24  ;;  %v651_v3 = vadd.f32 %v641_v22, %v603_v16 }
 0x139   : > { %v697_v10 = vadd.f32 %v687_v52, %v649_v45  ;;  %v652_v29 = vadd.f32 %v642_v62, %v604_v50  ;;  %v686_v8 = vmul.f32 %v2047_v59, %v1770_v39 }
 0x13a   : > { %v733_v12 = vpop.permute.xlu1 %732  ;;  %v781_v6 = vmul.f32 %v779_v15, %v749_v48  ;;  %v605_v48 = vadd.f32 %v595_v4, %v557_v43  ;;  %v699_v24 = vadd.f32 %v689_v0, %v651_v3  ;;  %v813_v15 = vld [vmem:[%s1589_s12 + $0x8] sm:$0xff] }
 0x13b   : > { %v747_v26 = vsel %vm745_vm2, %v744_v1, %v733_v12  ;;  %v590_v12 = vmul.f32 %v2042_v11, %v1668_v40  ;;  %v2044_v40 = vld [vmem:[#allocation24_spill] sm:$0xff]  ;;  %v698_v1 = vadd.f32 %v688_v19, %v650_v37 }
 0x13c   : > { %v685_v33 = vmul.f32 %v2044_v40, %v1770_v39  ;;  %v690_v55 = vmul.f32 %v2044_v40, %v1824_v41  ;;  %v783_v5 = vadd.f32 %v781_v6, %v694_v31  ;;  %v653_v18 = vadd.f32 %v643_v38, %v605_v48 }
 0x13d   : > { %v600_v49 = vadd.f32 %v590_v12, %v552_v35 }
 0x13e   : > { %v739_v25 = vpop.permute.xlu1 %738  ;;  %v700_v9 = vadd.f32 %v690_v55, %v652_v29  ;;  %v701_v35 = vadd.f32 %v691_v7, %v653_v18 }
 0x13f   : > { %v750_v57 = vsel %vm748_vm3, %v747_v26, %v739_v25  ;;  %v695_v25 = vadd.f32 %v685_v33, %v647_v23  ;;  %v648_v53 = vadd.f32 %v638_v28, %v600_v49 }
 0x140   : > { %v778_v63 = vmul.f32 %v750_v57, %v697_v10 }
 0x141   : > { %v696_v37 = vadd.f32 %v686_v8, %v648_v53 }
 0x142   : > { %v780_v34 = vadd.f32 %v778_v63, %v698_v1  ;;  %v812_v63 = vld [vmem:[%s1589_s12] sm:$0xff]  ;;  %s1382_s12 = smov [#allocation8]  }
 0x143   : > { %s1294_s11 = sshll.u32 %s1382_s12, 4  ;;  %s1295_s11 = int_to_ptr.vmem [resolvable:$false] %s1294_s11 }
 0x144   : > { %v782_v30 = vmul.f32 %v780_v34, %v750_v57  ;;  %s1296_s28 = scalar_lea.vmem %s1295_s11, 512  ;;  %p1297_p2 = scmp.lt.s32.totalorder %s1935_s27, %s1295_s11 }
 0x145   : > { %p1298_p8 = scmp.lt.s32.totalorder %s1296_s28, %s1290_s13 }
 0x146   : > { %v784_v19 = vadd.f32 %v782_v30, %v699_v24 }
 0x147   : > { %p1299_p6 = por %p1298_p8, %p1297_p2 }
 0x149   : > { %p1300_p12 = pnand %p1299_p6, %p1293_p1 }
 0x175   : > { %v754_v32 = vpop.permute.xlu0 %753 }
 0x176   : > { %v771_v51 = vsel %vm742_vm1, %v754_v32, %v2046_v17 }
 0x179   : > { %v756_v56 = vpop.permute.xlu1 %755  ;;  %v760_v54 = vpop.permute.xlu0 %759 }
 0x17a   : > { %v773_v26 = vsel %vm745_vm2, %v771_v51, %v760_v54  ;;  %v772_v36 = vsel %vm742_vm1, %v756_v56, %v2048_v13 }
 0x17d   : > { %v766_v45 = vpop.permute.xlu0 %765  ;;  %v762_v52 = vpop.permute.xlu1 %761 }
 0x17e   : > { %v775_v58 = vsel %vm748_vm3, %v773_v26, %v766_v45  ;;  %v774_v44 = vsel %vm745_vm2, %v772_v36, %v762_v52 }
 0x17f   : > { %v785_v21 = vmul.f32 %v775_v58, %v695_v25  ;;  %v791_v12 = vmul.f32 %v775_v58, %v696_v37 }
 0x181   : > { %v787_v32 = vadd.f32 %v785_v21, %v783_v5  ;;  %v768_v20 = vpop.permute.xlu1 %767 }
 0x182   : > { %v776_v57 = vsel %vm748_vm3, %v774_v44, %v768_v20 }
 0x183   : > { %v786_v41 = vmul.f32 %v776_v57, %v700_v9  ;;  %v789_v10 = vmul.f32 %v787_v32, %v1606_v2  ;;  %v792_v39 = vmul.f32 %v776_v57, %v701_v35 }
 0x185   : > { %v788_v11 = vadd.f32 %v786_v41, %v784_v19  ;;  %v793_v60 = vadd.f32 %v791_v12, %v789_v10 }
 0x187   : > { %v790_v47 = vmul.f32 %v788_v11, %v2036_v46 }
 0x189   : > { %v794_v14 = vadd.f32 %v792_v39, %v790_v47 }
 0x18b   : > { %v795_v61 = vpack.c.bf16 %v794_v14, %v793_v60 }
 0x18d   : > { %1093 = vmatmul.mubr.bf16.vlgmr.msra.gmra.mrb[0].mxu0 %v795_v61 }
 0x260   : > { %v896_v42 = vpop.f32.mrb[0].mxu0 }
 0x261   : > { %v897_v2 = vadd.f32 %v896_v42, %v812_v63  ;;  %v1094_v46 = vpop.f32.mrb[1].mxu0 }
 0x262   : > { %v899_v43 = vpop.f32.mrb[2].mxu0 }
 0x263   : > { %903 = vst [vmem:[%s301_s25] sm:$0xff] %v897_v2  ;;  %v900_v22 = vadd.f32 %v899_v43, %v813_v15  ;;  %v1095_v56 = vpop.f32.mrb[3].mxu0 }
 0x265   : > { %904 = vst [vmem:[%s301_s25 + $0x8] sm:$0xff] %v900_v22 }
 0x266   : > { %1303 = shalt.err (!%p1300_p12)
}
 0x267   : > { %s1304_s10 = scalar_lea.hbm %s1940_s7, 256  ;;  %s1308_s16 = scalar_lea.hbm %s1988_s5, 2048 }
 0x268   : > { %p1305_p13 = scmp.ne.s32.totalorder %s1940_s7, %s1304_s10  ;;  %p1309_p0 = scmp.lt.u32.totalorder %s1940_s7, %s1988_s5 }
 0x269   : > { %p1310_p3 = scmp.lt.u32.totalorder %s1308_s16, %s1304_s10  ;;  %p1312_p5 = scmp.lt.u32.totalorder %s1304_s10, %s1940_s7 }
 0x26a   : > { %p1306_p4 = pnand %p1305_p13, %p2049_p9 }
 0x26b   : > { %p1311_p7 = por %p1310_p3, %p1309_p0 }
 0x26c   : > { %p1307_p11 = pneg %p1306_p4 }
 0x26d   : > { %p1313_p10 = por %p1312_p5, %p1311_p7 }
 0x26f   : > { %p1314_p1 = pnand %p1313_p10, %p1307_p11 }
 0x271   : > { %1317 = shalt.err (!%p1314_p1)
}
 0x272   : > { %s1383_s23 = smov 128   ;;  %s1384_s25 = smov 8  }
 0x273   : > { %1106 = dma.vmem_to_hbm [thread:$0]  (%p2049_p9), %s1935_s27, 256, %s1940_s7, %s906_s22, %s1383_s23, %s1383_s23, %s1384_s25  }
 0x274 PF: > { %p1128_p2 = scmp.ge.s32.totalorder %s1360_s21, 2  ;;  %s934_s26 = sand.u32 1, %s1348_s18  }
 0x275   : > { %p2050_p8 = scmp.ne.s32.totalorder %s2013_s6, 0  ;;  %s935_s8 = scalar_lea.sflag [#allocation4], %s934_s26 }
 0x277   : > { %p1120_p6 = pnand %p1128_p2, %p2050_p8 }
 0x279   : > { %1343 = dma.done.wait (!%p1120_p6), %s935_s8, 256  }
 0x27a   : > { %1345 = vsyncadd (!%p1120_p6), %s935_s8, 4294967040  ;;  %s2051_s3 = sld [smem:[#allocation12_spill]]  ;;  %p19_p12 = scmp.ge.s32.totalorder %s1440_s24, 10  }
 0x27b   : > { %s2052_s18 = smov %s1352_s19  ;;  %s2053_s19 = smov %s1356_s20 }
 0x27c   : > { %s2055_s21 = smov %s1440_s24  ;;  %21 = sbr.rel (!%p19_p12) target bundleno = 8 (0x8), region = 99 }
 0x280   : > { %s2054_s20 = smov %s2051_s3 }
 0x283   :  { %940 = vsyncpa [#allocation3], 1 }
 0x284   :  { %942 = vsyncpa [#allocation3 + $0x1], 1 }
 0x285   :  { %943 = vsyncpa [#allocation6], 1 }
 0x286   :  { %944 = vsyncpa [#allocation4], 1 }
 0x287   :  { %946 = vsyncpa [#allocation4 + $0x1], 1 }

</bundles_post_ra>
